<compile_context>
chip_gen: v5e
topology: v5e:2x2
jax: 0.10.0
libtpu: 0.0.40
codegen_flags: <defaults>
</compile_context>

<pallas_src>
import jax
import jax.numpy as jnp
import numpy as np
from jax.experimental import pallas as pl
from jax.experimental.pallas import tpu as pltpu

# Model dims.
CIN = 4
COUT = 32
NUM_CLASSES = 10
KH = KW = 3

# TPU-friendly padded dims.
CIN_PAD = 8                      # per-tap channel pad (4 -> 8)
K_IM2COL = KH * KW * CIN_PAD     # 72 real contraction rows
K_PAD = 128                      # im2col contraction (72 -> 128): lane-dense
C_PAD = 128                      # conv output channels (32 -> 128)
NC_PAD = 128                     # logits (10 -> 128): lane-dense output store


def _round_up(x, m):
    return (x + m - 1) // m * m


# -----------------------------------------------------------------------------
# Fused kernel (BB images per grid step):
#   x_ref   : (BB, N_PAD, K_PAD)   bf16   im2col patches (72 real lanes)
#   cw_ref  : (K_PAD, C_PAD)       bf16   packed conv weight
#   cb_ref  : (1, C_PAD)           f32    conv bias
#   pool_ref: (BB, BB*N_PAD)       bf16   block-diag pooling matrix (scale+mask)
#   fw_ref  : (C_PAD, NC_PAD)      bf16   fc weight
#   fb_ref  : (1, NC_PAD)          f32    fc bias
#   o_ref   : (BB, NC_PAD)         f32    padded logits for these images
# -----------------------------------------------------------------------------
def _fused_kernel(x_ref, cw_ref, cb_ref, pool_ref, fw_ref, fb_ref, o_ref):
    BB, N, KP = x_ref.shape
    patches = x_ref[...].reshape(BB * N, KP)                       # bf16

    # Conv: one K=128 (72 real) matmul over all BB images at once.
    acc = jnp.dot(patches, cw_ref[...],
                  preferred_element_type=jnp.float32)              # (BB*N, C_PAD)
    feat = jnp.maximum(acc + cb_ref[...], 0.0)                     # f32

    # Global average pool as a single MXU matmul; 1/(H*W) scale and the
    # N-padding mask are pre-folded into pool_ref (no per-step iota/where).
    pooled = jnp.dot(pool_ref[...], feat.astype(jnp.bfloat16),
                     preferred_element_type=jnp.float32)           # (BB, C_PAD)

    logits = jnp.dot(pooled.astype(jnp.bfloat16), fw_ref[...],
                     preferred_element_type=jnp.float32) + fb_ref[...]
    o_ref[...] = logits.astype(o_ref.dtype)                        # (BB, NC_PAD)


# -----------------------------------------------------------------------------
# One-time weight packing (hoisted out of the per-forward path).
# -----------------------------------------------------------------------------
def pack_params(params):
    # PyTorch conv weight [Cout, Cin, KH, KW] -> single (K_PAD, C_PAD) bf16
    # matrix matching the im2col patch layout (tap-major, channel-minor).
    w = jnp.transpose(params["conv_w"], (2, 3, 1, 0))              # (KH,KW,CIN,COUT)
    w = w.reshape(KH * KW, CIN, COUT)
    w = jnp.pad(w, ((0, 0), (0, CIN_PAD - CIN), (0, C_PAD - COUT)))
    w = w.reshape(K_IM2COL, C_PAD)
    w = jnp.pad(w, ((0, K_PAD - K_IM2COL), (0, 0)))
    conv_b = jnp.pad(params["conv_b"], (0, C_PAD - COUT)).reshape(1, C_PAD)
    # PyTorch Linear weight [NC, C] -> (C_PAD, NC_PAD), bf16 MXU operand.
    fc_w = jnp.pad(params["fc_w"].T,
                   ((0, C_PAD - COUT), (0, NC_PAD - NUM_CLASSES)))
    fc_b = jnp.pad(params["fc_b"], (0, NC_PAD - NUM_CLASSES)).reshape(1, NC_PAD)
    return {
        "conv_w": w.astype(jnp.bfloat16),
        "conv_b": conv_b.astype(jnp.float32),
        "fc_w": fc_w.astype(jnp.bfloat16),
        "fc_b": fc_b.astype(jnp.float32),
    }


# -----------------------------------------------------------------------------
# NaiveModel.forward(x) == net(x)
# -----------------------------------------------------------------------------
@jax.jit
def naive_model_forward(x_nchw, packed):
    B, Cin, H, W = x_nchw.shape
    N = H * W
    N_PAD = _round_up(N, 8)

    BB = min(B, 8)                 # images per grid step (keep >=2 steps for
    B_pad = _round_up(B, BB)       # v7x megacore when the batch allows it)
    grid = B_pad // BB

    # NCHW -> zero-padded NHWC (spatial +1 halo, channels 4 -> 8, batch pad).
    x = jnp.transpose(x_nchw, (0, 2, 3, 1))
    x = jnp.pad(x, ((0, B_pad - B), (1, 1), (1, 1), (0, CIN_PAD - Cin)))

    # Lane-dense im2col: concat the 9 shifted taps along channels (72 -> 128).
    taps = [x[:, ki:ki + H, kj:kj + W, :]
            for ki in range(KH) for kj in range(KW)]
    patches = jnp.concatenate(taps, axis=-1).reshape(B_pad, N, K_IM2COL)
    patches = jnp.pad(
        patches, ((0, 0), (0, N_PAD - N), (0, K_PAD - K_IM2COL))
    ).astype(jnp.bfloat16)

    # Block-diagonal pooling matrix: pool[b, b*N_PAD + n] = 1/(H*W) for n < N,
    # 0 for padded rows (shape-robust mask) -- built once, resident in VMEM.
    valid = (jnp.arange(N_PAD) < N).astype(jnp.float32) / (H * W)
    pool = jnp.kron(jnp.eye(BB, dtype=jnp.float32), valid[None, :])
    pool = pool.astype(jnp.bfloat16)                               # (BB, BB*N_PAD)

    flops = (2 * B_pad * N_PAD * K_PAD * C_PAD
             + 2 * B_pad * BB * N_PAD * C_PAD
             + 2 * B_pad * C_PAD * NC_PAD)
    bytes_accessed = (patches.size * 2 + pool.size * 2
                      + packed["conv_w"].size * 2 + packed["fc_w"].size * 2
                      + 4 * (packed["conv_b"].size + packed["fc_b"].size
                             + B_pad * NC_PAD))

    out = pl.pallas_call(
        _fused_kernel,
        out_shape=jax.ShapeDtypeStruct((B_pad, NC_PAD), jnp.float32),
        grid=(grid,),
        in_specs=[
            pl.BlockSpec((BB, N_PAD, K_PAD), lambda b: (b, 0, 0)),
            pl.BlockSpec((K_PAD, C_PAD), lambda b: (0, 0)),
            pl.BlockSpec((1, C_PAD), lambda b: (0, 0)),
            pl.BlockSpec((BB, BB * N_PAD), lambda b: (0, 0)),
            pl.BlockSpec((C_PAD, NC_PAD), lambda b: (0, 0)),
            pl.BlockSpec((1, NC_PAD), lambda b: (0, 0)),
        ],
        out_specs=pl.BlockSpec((BB, NC_PAD), lambda b: (b, 0)),
        compiler_params=pltpu.CompilerParams(
            dimension_semantics=("parallel",)),
        cost_estimate=pl.CostEstimate(
            flops=flops, transcendentals=0, bytes_accessed=bytes_accessed),
    )(patches, packed["conv_w"], packed["conv_b"], pool,
      packed["fc_w"], packed["fc_b"])

    return out[:B, :NUM_CLASSES]


# -----------------------------------------------------------------------------
# Plain-JAX reference (independent math: lax conv, not the im2col helper).
# -----------------------------------------------------------------------------
def reference_forward(x_nchw, params):
    y = jax.lax.conv_general_dilated(
        x_nchw, params["conv_w"], window_strides=(1, 1), padding="SAME",
        dimension_numbers=("NCHW", "OIHW", "NCHW"))
    y = jnp.maximum(y + params["conv_b"][None, :, None, None], 0.0)
    pooled = y.mean(axis=(2, 3))                                   # (B, Cout)
    return pooled @ params["fc_w"].T + params["fc_b"][None, :]


if __name__ == "__main__":
    B, H, W = 2, 16, 16

    key = jax.random.PRNGKey(0)
    k_x, k_cw, k_cb, k_fw, k_fb = jax.random.split(key, 5)

    x = jax.random.normal(k_x, (B, CIN, H, W), dtype=jnp.float32)
    params = {
        "conv_w": jax.random.normal(k_cw, (COUT, CIN, KH, KW), jnp.float32) * 0.1,
        "conv_b": jax.random.normal(k_cb, (COUT,), jnp.float32) * 0.1,
        "fc_w":   jax.random.normal(k_fw, (NUM_CLASSES, COUT), jnp.float32) * 0.1,
        "fc_b":   jax.random.normal(k_fb, (NUM_CLASSES,), jnp.float32) * 0.1,
    }

    packed = pack_params(params)                 # hoisted weight packing
    out = jax.block_until_ready(naive_model_forward(x, packed))
    ref = jax.block_until_ready(reference_forward(x, params))

    assert out.shape == (B, NUM_CLASSES)
    # bf16 MXU operands with f32 accumulation -> relaxed tolerance vs f32 ref.
    assert np.allclose(np.asarray(out), np.asarray(ref), atol=1e-2, rtol=1e-2)

    # TODO(synk): NaiveModel.calibrate / get_featurizer / score_function are
    # training-harness plumbing with no tensor compute; not translated.
    print("KERNEL_OK")
</pallas_src>

<mosaic_0001>
module attributes {stable_mosaic.version = 11 : i64} {
  func.func @_fused_kernel(%arg0: i32, %arg1: memref<2x256x128xbf16, #tpu.memory_space<vmem>>, %arg2: memref<128x128xbf16, #tpu.memory_space<vmem>>, %arg3: memref<1x128xf32, #tpu.memory_space<vmem>>, %arg4: memref<2x512xbf16, #tpu.memory_space<vmem>>, %arg5: memref<128x128xbf16, #tpu.memory_space<vmem>>, %arg6: memref<1x128xf32, #tpu.memory_space<vmem>>, %arg7: memref<2x128xf32, #tpu.memory_space<vmem>>) attributes {dimension_semantics = [#tpu.dimension_semantics<parallel>], iteration_bounds = array<i64: 1>, scalar_prefetch = 0 : i64, scratch_operands = 0 : i64, tpu.core_type = #tpu.core_type<tc>, window_params = [{transform_indices = @transform_0, window_bounds = array<i64: 2, 256, 128>}, {pipeline_mode = #tpu.pipeline_mode<synchronous>, transform_indices = @transform_1, window_bounds = array<i64: 128, 128>}, {pipeline_mode = #tpu.pipeline_mode<synchronous>, transform_indices = @transform_2, window_bounds = array<i64: 1, 128>}, {pipeline_mode = #tpu.pipeline_mode<synchronous>, transform_indices = @transform_3, window_bounds = array<i64: 2, 512>}, {pipeline_mode = #tpu.pipeline_mode<synchronous>, transform_indices = @transform_4, window_bounds = array<i64: 128, 128>}, {pipeline_mode = #tpu.pipeline_mode<synchronous>, transform_indices = @transform_5, window_bounds = array<i64: 1, 128>}, {transform_indices = @transform_6, window_bounds = array<i64: 2, 128>}]} {
    %c0 = arith.constant 0 : index
    %c0_0 = arith.constant 0 : index
    %c0_1 = arith.constant 0 : index
    %0 = vector.load %arg1[%c0, %c0_0, %c0_1] : memref<2x256x128xbf16, #tpu.memory_space<vmem>>, vector<2x256x128xbf16>
    %1 = vector.shape_cast %0 : vector<2x256x128xbf16> to vector<512x128xbf16>
    %c0_2 = arith.constant 0 : index
    %c0_3 = arith.constant 0 : index
    %2 = vector.load %arg2[%c0_2, %c0_3] : memref<128x128xbf16, #tpu.memory_space<vmem>>, vector<128x128xbf16>
    %cst = arith.constant dense<0.000000e+00> : vector<512x128xf32>
    %3 = tpu.matmul %1, %2, %cst {dimension_numbers = #tpu.dot_dimension_numbers<[1], [0], [0], [1], [0, 0, 1, 1], [], []>} : vector<512x128xbf16>, vector<128x128xbf16>, vector<512x128xf32> -> vector<512x128xf32>
    %c0_4 = arith.constant 0 : index
    %c0_5 = arith.constant 0 : index
    %4 = vector.load %arg3[%c0_4, %c0_5] : memref<1x128xf32, #tpu.memory_space<vmem>>, vector<1x128xf32>
    %5 = vector.broadcast %4 : vector<1x128xf32> to vector<512x128xf32>
    %6 = arith.addf %3, %5 : vector<512x128xf32>
    %cst_6 = arith.constant 0.000000e+00 : f32
    %7 = vector.broadcast %cst_6 : f32 to vector<512x128xf32>
    %8 = arith.maximumf %6, %7 : vector<512x128xf32>
    %c0_7 = arith.constant 0 : index
    %c0_8 = arith.constant 0 : index
    %9 = vector.load %arg4[%c0_7, %c0_8] : memref<2x512xbf16, #tpu.memory_space<vmem>>, vector<2x512xbf16>
    %10 = arith.truncf %8 : vector<512x128xf32> to vector<512x128xbf16>
    %cst_9 = arith.constant dense<0.000000e+00> : vector<2x128xf32>
    %11 = tpu.matmul %9, %10, %cst_9 {dimension_numbers = #tpu.dot_dimension_numbers<[1], [0], [0], [1], [0, 0, 1, 1], [], []>} : vector<2x512xbf16>, vector<512x128xbf16>, vector<2x128xf32> -> vector<2x128xf32>
    %12 = arith.truncf %11 : vector<2x128xf32> to vector<2x128xbf16>
    %c0_10 = arith.constant 0 : index
    %c0_11 = arith.constant 0 : index
    %13 = vector.load %arg5[%c0_10, %c0_11] : memref<128x128xbf16, #tpu.memory_space<vmem>>, vector<128x128xbf16>
    %cst_12 = arith.constant dense<0.000000e+00> : vector<2x128xf32>
    %14 = tpu.matmul %12, %13, %cst_12 {dimension_numbers = #tpu.dot_dimension_numbers<[1], [0], [0], [1], [0, 0, 1, 1], [], []>} : vector<2x128xbf16>, vector<128x128xbf16>, vector<2x128xf32> -> vector<2x128xf32>
    %c0_13 = arith.constant 0 : index
    %c0_14 = arith.constant 0 : index
    %15 = vector.load %arg6[%c0_13, %c0_14] : memref<1x128xf32, #tpu.memory_space<vmem>>, vector<1x128xf32>
    %16 = vector.broadcast %15 : vector<1x128xf32> to vector<2x128xf32>
    %17 = arith.addf %14, %16 : vector<2x128xf32>
    %c0_15 = arith.constant 0 : index
    %c0_16 = arith.constant 0 : index
    %18 = vector.load %arg7[%c0_15, %c0_16] : memref<2x128xf32, #tpu.memory_space<vmem>>, vector<2x128xf32>
    tpu.vector_store %arg7[%c0_15, %c0_16], %17 {strides = array<i32>} : memref<2x128xf32, #tpu.memory_space<vmem>>, vector<2x128xf32>,
    return
  }
  func.func @transform_0(%arg0: i32) -> (i32, i32, i32) {
    %c0_i32 = arith.constant 0 : i32
    %c0_i32_0 = arith.constant 0 : i32
    %c0_i32_1 = arith.constant 0 : i32
    return %arg0, %c0_i32, %c0_i32_0 : i32, i32, i32
  }
  func.func @transform_1(%arg0: i32) -> (i32, i32) {
    %c0_i32 = arith.constant 0 : i32
    %c0_i32_0 = arith.constant 0 : i32
    %c0_i32_1 = arith.constant 0 : i32
    return %c0_i32, %c0_i32_0 : i32, i32
  }
  func.func @transform_2(%arg0: i32) -> (i32, i32) {
    %c0_i32 = arith.constant 0 : i32
    %c0_i32_0 = arith.constant 0 : i32
    %c0_i32_1 = arith.constant 0 : i32
    return %c0_i32, %c0_i32_0 : i32, i32
  }
  func.func @transform_3(%arg0: i32) -> (i32, i32) {
    %c0_i32 = arith.constant 0 : i32
    %c0_i32_0 = arith.constant 0 : i32
    %c0_i32_1 = arith.constant 0 : i32
    return %c0_i32, %c0_i32_0 : i32, i32
  }
  func.func @transform_4(%arg0: i32) -> (i32, i32) {
    %c0_i32 = arith.constant 0 : i32
    %c0_i32_0 = arith.constant 0 : i32
    %c0_i32_1 = arith.constant 0 : i32
    return %c0_i32, %c0_i32_0 : i32, i32
  }
  func.func @transform_5(%arg0: i32) -> (i32, i32) {
    %c0_i32 = arith.constant 0 : i32
    %c0_i32_0 = arith.constant 0 : i32
    %c0_i32_1 = arith.constant 0 : i32
    return %c0_i32, %c0_i32_0 : i32, i32
  }
  func.func @transform_6(%arg0: i32) -> (i32, i32) {
    %c0_i32 = arith.constant 0 : i32
    %c0_i32_0 = arith.constant 0 : i32
    return %arg0, %c0_i32 : i32, i32
  }
}

</mosaic_0001>

<bundles_post_ra>
// kernel: naive_model_forward.1
= control target key start
LH: loop header
LB: loop body
LE: loop exit
PB: predicated region body
PF: predicated region fallthrough
CT: control target
= control target key end

     0   :  { %s1398_s0 = inlined_call_operand.vmem [shape: bf16[2,256,128], index: 0, kind: input, shape index: {}]   ;;  %s1399_s1 = inlined_call_operand.vmem [shape: bf16[128,128], index: 1, kind: input, shape index: {}]   ;;  %s1400_s2 = inlined_call_operand.vmem [shape: f32[1,128], index: 2, kind: input, shape index: {}]   ;;  %s1401_s3 = inlined_call_operand.vmem [shape: bf16[2,512], index: 3, kind: input, shape index: {}]   ;;  %s1402_s4 = inlined_call_operand.vmem [shape: bf16[128,128], index: 4, kind: input, shape index: {}]   ;;  %s1403_s5 = inlined_call_operand.vmem [shape: f32[1,128], index: 5, kind: input, shape index: {}]   ;;  %s1404_s6 = inlined_call_operand.hbm [shape: f32[2,128], index: 6, kind: output, shape index: {}]  }
   0x1   :  { %v1006_v0 = vld [vmem:[%s1399_s1 + $0x38] sm:$0xff]  ;;  %v1005_v1 = vld [vmem:[%s1399_s1 + $0x30] sm:$0xff] }
   0x2   :  { %348 = vmatpush.bf16.msra.mxu0 %v1006_v0  ;;  %1015 = vmatpush.bf16.msra.mxu1 %v1006_v0 }
   0x3   :  { %1016 = vmatpush.bf16.msra.mxu2 %v1006_v0  ;;  %1017 = vmatpush.bf16.msra.mxu3 %v1006_v0 }
   0x4   :  { %11 = vsyncpa [#allocation3], 0  ;;  %v1004_v2 = vld [vmem:[%s1399_s1 + $0x28] sm:$0xff]  ;;  %v1003_v3 = vld [vmem:[%s1399_s1 + $0x20] sm:$0xff]  ;;  %s766_s23 = sshll.u32 %s1404_s6, 4  ;;  %s767_s23 = int_to_ptr.hbm [resolvable:$true] %s766_s23 }
   0x5   :  { %v1002_v4 = vld [vmem:[%s1399_s1 + $0x18] sm:$0xff]  ;;  %v1001_v5 = vld [vmem:[%s1399_s1 + $0x10] sm:$0xff]  ;;  %v1000_v6 = vld [vmem:[%s1399_s1 + $0x8] sm:$0xff] }
   0x6   :  { %349 = vmatpush.bf16.msra.mxu0 %v1005_v1  ;;  %1018 = vmatpush.bf16.msra.mxu1 %v1005_v1  ;;  %v999_v7 = vld [vmem:[%s1399_s1] sm:$0xff]  ;;  %v977_v9 = vld [vmem:[%s1398_s0 + $0x50] sm:$0xff]  ;;  %v984_v10 = vld [vmem:[%s1398_s0 + $0x88] sm:$0xff]  ;;  %s1068_s1 = smov [#allocation2]  }
   0x7   :  { %1019 = vmatpush.bf16.msra.mxu2 %v1005_v1  ;;  %1020 = vmatpush.bf16.msra.mxu3 %v1005_v1  ;;  %v967_v8 = vld [vmem:[%s1398_s0] sm:$0xff]  ;;  %v990_v11 = vld [vmem:[%s1398_s0 + $0xb8] sm:$0xff]  ;;  %v968_v12 = vld [vmem:[%s1398_s0 + $0x8] sm:$0xff]  ;;  %s764_s21 = sshll.u32 %s1068_s1, 4  ;;  %s765_s21 = int_to_ptr.vmem [resolvable:$true] %s764_s21 }
   0x8   :  { %v978_v13 = vld [vmem:[%s1398_s0 + $0x58] sm:$0xff]  ;;  %v985_v14 = vld [vmem:[%s1398_s0 + $0x90] sm:$0xff]  ;;  %v991_v15 = vld [vmem:[%s1398_s0 + $0xc0] sm:$0xff] }
   0x9   :  { %v969_v16 = vld [vmem:[%s1398_s0 + $0x10] sm:$0xff]  ;;  %v979_v17 = vld [vmem:[%s1398_s0 + $0x60] sm:$0xff]  ;;  %v986_v18 = vld [vmem:[%s1398_s0 + $0x98] sm:$0xff] }
   0xa   :  { %350 = vmatpush.bf16.msra.mxu0 %v1004_v2  ;;  %1021 = vmatpush.bf16.msra.mxu1 %v1004_v2  ;;  %v992_v19 = vld [vmem:[%s1398_s0 + $0xc8] sm:$0xff]  ;;  %v970_v20 = vld [vmem:[%s1398_s0 + $0x18] sm:$0xff]  ;;  %v987_v22 = vld [vmem:[%s1398_s0 + $0xa0] sm:$0xff] }
   0xb   :  { %1022 = vmatpush.bf16.msra.mxu2 %v1004_v2  ;;  %1023 = vmatpush.bf16.msra.mxu3 %v1004_v2  ;;  %v980_v21 = vld [vmem:[%s1398_s0 + $0x68] sm:$0xff]  ;;  %v993_v23 = vld [vmem:[%s1398_s0 + $0xd0] sm:$0xff]  ;;  %v971_v24 = vld [vmem:[%s1398_s0 + $0x20] sm:$0xff] }
   0xc   :  { %v981_v25 = vld [vmem:[%s1398_s0 + $0x70] sm:$0xff]  ;;  %v988_v26 = vld [vmem:[%s1398_s0 + $0xa8] sm:$0xff]  ;;  %v994_v27 = vld [vmem:[%s1398_s0 + $0xd8] sm:$0xff] }
   0xd   :  { %v972_v28 = vld [vmem:[%s1398_s0 + $0x28] sm:$0xff]  ;;  %v982_v29 = vld [vmem:[%s1398_s0 + $0x78] sm:$0xff]  ;;  %v989_v30 = vld [vmem:[%s1398_s0 + $0xb0] sm:$0xff] }
   0xe   :  { %351 = vmatpush.bf16.msra.mxu0 %v1003_v3  ;;  %1024 = vmatpush.bf16.msra.mxu1 %v1003_v3  ;;  %v995_v31 = vld [vmem:[%s1398_s0 + $0xe0] sm:$0xff]  ;;  %v973_v32 = vld [vmem:[%s1398_s0 + $0x30] sm:$0xff]  ;;  %v996_v33 = vld [vmem:[%s1398_s0 + $0xe8] sm:$0xff] }
   0xf   :  { %1025 = vmatpush.bf16.msra.mxu2 %v1003_v3  ;;  %1026 = vmatpush.bf16.msra.mxu3 %v1003_v3  ;;  %v974_v34 = vld [vmem:[%s1398_s0 + $0x38] sm:$0xff]  ;;  %v997_v35 = vld [vmem:[%s1398_s0 + $0xf0] sm:$0xff]  ;;  %v983_v36 = vld [vmem:[%s1398_s0 + $0x80] sm:$0xff] }
  0x10   :  { %v975_v37 = vld [vmem:[%s1398_s0 + $0x40] sm:$0xff]  ;;  %v998_v40 = vld [vmem:[%s1398_s0 + $0xf8] sm:$0xff]  ;;  %v976_v54 = vld [vmem:[%s1398_s0 + $0x48] sm:$0xff] }
  0x11   :  { %v1224_v41 = vld [vmem:[%s1400_s2] ss:$0 sm:$0xff] }
  0x12   :  { %352 = vmatpush.bf16.msra.mxu0 %v1002_v4  ;;  %1027 = vmatpush.bf16.msra.mxu1 %v1002_v4 }
  0x13   :  { %1028 = vmatpush.bf16.msra.mxu2 %v1002_v4  ;;  %1029 = vmatpush.bf16.msra.mxu3 %v1002_v4 }
  0x16   :  { %353 = vmatpush.bf16.msra.mxu0 %v1001_v5  ;;  %1030 = vmatpush.bf16.msra.mxu1 %v1001_v5 }
  0x17   :  { %1031 = vmatpush.bf16.msra.mxu2 %v1001_v5  ;;  %1032 = vmatpush.bf16.msra.mxu3 %v1001_v5 }
  0x1a   :  { %354 = vmatpush.bf16.msra.mxu0 %v1000_v6  ;;  %1033 = vmatpush.bf16.msra.mxu1 %v1000_v6 }
  0x1b   :  { %1034 = vmatpush.bf16.msra.mxu2 %v1000_v6  ;;  %1035 = vmatpush.bf16.msra.mxu3 %v1000_v6 }
  0x1e   :  { %355 = vmatpush.bf16.msra.mxu0 %v999_v7  ;;  %1036 = vmatpush.bf16.msra.mxu1 %v999_v7 }
  0x1f   :  { %1037 = vmatpush.bf16.msra.mxu2 %v999_v7  ;;  %1038 = vmatpush.bf16.msra.mxu3 %v999_v7 }
  0x21   :  { %356 = vmatmul.bf16.vlgmr.msra.gmra.mxu0 %v967_v8  ;;  %406 = vmatmul.bf16.vlgmr.msra.gmra.mxu1 %v977_v9 }
  0x22   :  { %441 = vmatmul.bf16.vlgmr.msra.gmra.mxu2 %v984_v10  ;;  %471 = vmatmul.bf16.vlgmr.msra.gmra.mxu3 %v990_v11 }
  0x31   :  { %361 = vmatmul.bf16.gmra.mxu0 %v968_v12  ;;  %411 = vmatmul.bf16.gmra.mxu1 %v978_v13 }
  0x32   :  { %446 = vmatmul.bf16.gmra.mxu2 %v985_v14  ;;  %476 = vmatmul.bf16.gmra.mxu3 %v991_v15 }
  0x41   :  { %366 = vmatmul.bf16.gmra.mxu0 %v969_v16  ;;  %416 = vmatmul.bf16.gmra.mxu1 %v979_v17 }
  0x42   :  { %451 = vmatmul.bf16.gmra.mxu2 %v986_v18  ;;  %481 = vmatmul.bf16.gmra.mxu3 %v992_v19 }
  0x51   :  { %371 = vmatmul.bf16.gmra.mxu0 %v970_v20  ;;  %421 = vmatmul.bf16.gmra.mxu1 %v980_v21 }
  0x52   :  { %456 = vmatmul.bf16.gmra.mxu2 %v987_v22  ;;  %486 = vmatmul.bf16.gmra.mxu3 %v993_v23 }
  0x61   :  { %376 = vmatmul.bf16.gmra.mxu0 %v971_v24  ;;  %426 = vmatmul.bf16.gmra.mxu1 %v981_v25 }
  0x62   :  { %461 = vmatmul.bf16.gmra.mxu2 %v988_v26  ;;  %491 = vmatmul.bf16.gmra.mxu3 %v994_v27 }
  0x71   :  { %381 = vmatmul.bf16.gmra.mxu0 %v972_v28  ;;  %431 = vmatmul.bf16.gmra.mxu1 %v982_v29 }
  0x72   :  { %466 = vmatmul.bf16.gmra.mxu2 %v989_v30  ;;  %496 = vmatmul.bf16.gmra.mxu3 %v995_v31 }
  0x81   :  { %386 = vmatmul.bf16.gmra.mxu0 %v973_v32  ;;  %436 = vmatmul.bf16.gmra.mxu1 %v983_v36 }
  0x82   :  { %501 = vmatmul.bf16.gmra.mxu3 %v996_v33 }
  0x91   :  { %391 = vmatmul.bf16.gmra.mxu0 %v974_v34 }
  0x92   :  { %506 = vmatmul.bf16.gmra.mxu3 %v997_v35 }
  0x9e   :  { %v357_v38 = vpop.f32.mrf.mxu0  ;;  %v407_v39 = vpop.f32.mrf.mxu1 }
  0x9f   :  { %v358_v42 = vadd.f32 %v1224_v41, %v357_v38  ;;  %v408_v59 = vadd.f32 %v1224_v41, %v407_v39 }
  0xa1   :  { %396 = vmatmul.bf16.gmra.mxu0 %v975_v37  ;;  %v517_v48 = vmax.f32 %v358_v42, 0.0  ;;  %v537_v63 = vmax.f32 %v408_v59, 0.0 }
  0xa2   :  { %511 = vmatmul.bf16.gmra.mxu3 %v998_v40 }
  0xa5   :  { %v442_v43 = vpop.f32.mrf.mxu2  ;;  %v472_v44 = vpop.f32.mrf.mxu3 }
  0xa6   :  { %v359_v45 = vpop.f32.mrf.mxu0  ;;  %v409_v46 = vpop.f32.mrf.mxu1  ;;  %v473_v50 = vadd.f32 %v1224_v41, %v472_v44  ;;  %v443_v1 = vadd.f32 %v1224_v41, %v442_v43 }
  0xa7   :  { %v360_v47 = vadd.f32 %v1224_v41, %v359_v45  ;;  %v410_v60 = vadd.f32 %v1224_v41, %v409_v46 }
  0xa8   :  { %v563_v55 = vmax.f32 %v473_v50, 0.0  ;;  %v551_v10 = vmax.f32 %v443_v1, 0.0 }
  0xa9   :  { %v518_v49 = vmax.f32 %v360_v47, 0.0  ;;  %v538_v0 = vmax.f32 %v410_v60, 0.0 }
  0xab   :  { %v1229_v51 = vpack.c.bf16 %v518_v49, %v517_v48  ;;  %v1241_v9 = vpack.c.bf16 %v538_v0, %v537_v63 }
  0xad   :  { %v444_v52 = vpop.f32.mrf.mxu2  ;;  %v474_v53 = vpop.f32.mrf.mxu3 }
  0xae   :  { %v362_v56 = vpop.f32.mrf.mxu0  ;;  %v412_v57 = vpop.f32.mrf.mxu1  ;;  %v475_v58 = vadd.f32 %v1224_v41, %v474_v53  ;;  %v445_v2 = vadd.f32 %v1224_v41, %v444_v52 }
  0xaf   :  { %v363_v3 = vadd.f32 %v1224_v41, %v362_v56  ;;  %v413_v23 = vadd.f32 %v1224_v41, %v412_v57 }
  0xb0   :  { %v564_v61 = vmax.f32 %v475_v58, 0.0  ;;  %v552_v11 = vmax.f32 %v445_v2, 0.0 }
  0xb1   :  { %401 = vmatmul.bf16.gmra.mxu0 %v976_v54  ;;  %v519_v12 = vmax.f32 %v363_v3, 0.0  ;;  %v539_v27 = vmax.f32 %v413_v23, 0.0 }
  0xb2   :  { %v605_v62 = vpack.c.bf16 %v564_v61, %v563_v55  ;;  %v1246_v18 = vpack.c.bf16 %v552_v11, %v551_v10 }
  0xb4   :  { %650 = vmatpush.bf16.msrb.mxu3 %v605_v62 }
  0xb5   :  { %v447_v4 = vpop.f32.mrf.mxu2  ;;  %v477_v5 = vpop.f32.mrf.mxu3 }
  0xb6   :  { %v364_v6 = vpop.f32.mrf.mxu0  ;;  %v414_v7 = vpop.f32.mrf.mxu1  ;;  %v478_v14 = vadd.f32 %v1224_v41, %v477_v5  ;;  %v448_v29 = vadd.f32 %v1224_v41, %v447_v4 }
  0xb7   :  { %v365_v8 = vadd.f32 %v1224_v41, %v364_v6  ;;  %v415_v24 = vadd.f32 %v1224_v41, %v414_v7 }
  0xb8   :  { %v565_v19 = vmax.f32 %v478_v14, 0.0  ;;  %v553_v38 = vmax.f32 %v448_v29, 0.0 }
  0xb9   :  { %v520_v13 = vmax.f32 %v365_v8, 0.0  ;;  %v540_v28 = vmax.f32 %v415_v24, 0.0 }
  0xbb   :  { %v1244_v15 = vpack.c.bf16 %v520_v13, %v519_v12  ;;  %v1263_v37 = vpack.c.bf16 %v540_v28, %v539_v27 }
  0xbd   :  { %v449_v16 = vpop.f32.mrf.mxu2  ;;  %v479_v17 = vpop.f32.mrf.mxu3 }
  0xbe   :  { %v367_v20 = vpop.f32.mrf.mxu0  ;;  %v1248_v21 = vpop.f32.mrf.mxu1  ;;  %v480_v22 = vadd.f32 %v1224_v41, %v479_v17  ;;  %v450_v30 = vadd.f32 %v1224_v41, %v449_v16 }
  0xbf   :  { %v368_v31 = vadd.f32 %v1224_v41, %v367_v20 }
  0xc0   :  { %v566_v25 = vmax.f32 %v480_v22, 0.0  ;;  %v554_v39 = vmax.f32 %v450_v30, 0.0 }
  0xc1   :  { %v521_v40 = vmax.f32 %v368_v31, 0.0 }
  0xc2   :  { %v1253_v26 = vpack.c.bf16 %v566_v25, %v565_v19  ;;  %v1270_v47 = vpack.c.bf16 %v554_v39, %v553_v38 }
  0xc5   :  { %v1258_v32 = vpop.f32.mrf.mxu2  ;;  %v482_v33 = vpop.f32.mrf.mxu3 }
  0xc6   :  { %v369_v34 = vpop.f32.mrf.mxu0  ;;  %v1260_v35 = vpop.f32.mrf.mxu1  ;;  %v483_v43 = vadd.f32 %v1224_v41, %v482_v33 }
  0xc7   :  { %v370_v36 = vadd.f32 %v1224_v41, %v369_v34 }
  0xc8   :  { %v567_v48 = vmax.f32 %v483_v43, 0.0 }
  0xc9   :  { %v522_v42 = vmax.f32 %v370_v36, 0.0 }
  0xcb   :  { %v1266_v44 = vpack.c.bf16 %v522_v42, %v521_v40 }
  0xcd   :  { %v1268_v45 = vpop.f32.mrf.mxu2  ;;  %v484_v46 = vpop.f32.mrf.mxu3 }
  0xce   :  { %v372_v49 = vpop.f32.mrf.mxu0  ;;  %v422_v50 = vpop.f32.mrf.mxu1  ;;  %v485_v52 = vadd.f32 %v1224_v41, %v484_v46 }
  0xcf   :  { %v373_v55 = vadd.f32 %v1224_v41, %v372_v49  ;;  %v423_v39 = vadd.f32 %v1224_v41, %v422_v50 }
  0xd0   :  { %v568_v53 = vmax.f32 %v485_v52, 0.0 }
  0xd1   :  { %v523_v61 = vmax.f32 %v373_v55, 0.0  ;;  %v543_v55 = vmax.f32 %v423_v39, 0.0 }
  0xd2   :  { %v1273_v54 = vpack.c.bf16 %v568_v53, %v567_v48 }
  0xd5   :  { %v457_v56 = vpop.f32.mrf.mxu2  ;;  %v487_v57 = vpop.f32.mrf.mxu3 }
  0xd6   :  { %v374_v58 = vpop.f32.mrf.mxu0  ;;  %v424_v59 = vpop.f32.mrf.mxu1  ;;  %v488_v63 = vadd.f32 %v1224_v41, %v487_v57 }
  0xd7   :  { %v375_v60 = vadd.f32 %v1224_v41, %v374_v58  ;;  %v425_v40 = vadd.f32 %v1224_v41, %v424_v59 }
  0xd8   :  { %v569_v3 = vmax.f32 %v488_v63, 0.0  ;;  %v418_v63 = vadd.f32 %v1224_v41, %v1248_v21 }
  0xd9   :  { %v524_v62 = vmax.f32 %v375_v60, 0.0  ;;  %v544_v57 = vmax.f32 %v425_v40, 0.0 }
  0xdb   :  { %v1278_v0 = vpack.c.bf16 %v524_v62, %v523_v61 }
  0xdd   :  { %v459_v1 = vpop.f32.mrf.mxu2  ;;  %v489_v2 = vpop.f32.mrf.mxu3 }
  0xde   :  { %v1280_v4 = vpop.f32.mrf.mxu0  ;;  %v427_v5 = vpop.f32.mrf.mxu1  ;;  %v490_v6 = vadd.f32 %v1224_v41, %v489_v2  ;;  %v420_v2 = vadd.f32 %v1224_v41, %v1260_v35  ;;  %v453_v35 = vadd.f32 %v1224_v41, %v1258_v32 }
  0xdf   :  { %v428_v28 = vadd.f32 %v1224_v41, %v427_v5  ;;  %v460_v5 = vadd.f32 %v1224_v41, %v459_v1 }
  0xe0   :  { %v570_v7 = vmax.f32 %v490_v6, 0.0 }
  0xe1   :  { %v545_v42 = vmax.f32 %v428_v28, 0.0 }
  0xe2   :  { %v1283_v8 = vpack.c.bf16 %v570_v7, %v569_v3  ;;  %v458_v3 = vadd.f32 %v1224_v41, %v457_v56  ;;  %v455_v56 = vadd.f32 %v1224_v41, %v1268_v45 }
  0xe4   :  { %v556_v28 = vmax.f32 %v455_v56, 0.0 }
  0xe5   :  { %v462_v10 = vpop.f32.mrf.mxu2  ;;  %v492_v11 = vpop.f32.mrf.mxu3 }
  0xe6   :  { %v1285_v12 = vpop.f32.mrf.mxu0  ;;  %v429_v13 = vpop.f32.mrf.mxu1  ;;  %v493_v14 = vadd.f32 %v1224_v41, %v492_v11  ;;  %v463_v52 = vadd.f32 %v1224_v41, %v462_v10  ;;  %v595_v11 = vpack.c.bf16 %v544_v57, %v543_v55 }
  0xe7   :  { %v430_v29 = vadd.f32 %v1224_v41, %v429_v13 }
  0xe8   :  { %v571_v19 = vmax.f32 %v493_v14, 0.0  ;;  %v559_v6 = vmax.f32 %v463_v52, 0.0  ;;  %v541_v14 = vmax.f32 %v418_v63, 0.0  ;;  %v378_v63 = vadd.f32 %v1224_v41, %v1280_v4 }
  0xe9   :  { %v546_v43 = vmax.f32 %v430_v29, 0.0 }
  0xeb   :  { %v596_v60 = vpack.c.bf16 %v546_v43, %v545_v42 }
  0xed   :  { %v464_v16 = vpop.f32.mrf.mxu2  ;;  %v494_v17 = vpop.f32.mrf.mxu3 }
  0xee   :  { %v1288_v20 = vpop.f32.mrf.mxu0  ;;  %v432_v22 = vpop.f32.mrf.mxu1  ;;  %v495_v23 = vadd.f32 %v1224_v41, %v494_v17  ;;  %v465_v53 = vadd.f32 %v1224_v41, %v464_v16  ;;  %v542_v16 = vmax.f32 %v420_v2, 0.0  ;;  %v557_v17 = vmax.f32 %v458_v3, 0.0 }
  0xef   :  { %v433_v27 = vadd.f32 %v1224_v41, %v432_v22 }
  0xf0   :  { %v572_v24 = vmax.f32 %v495_v23, 0.0  ;;  %v560_v7 = vmax.f32 %v465_v53, 0.0  ;;  %v594_v23 = vpack.c.bf16 %v542_v16, %v541_v14 }
  0xf1   :  { %v547_v36 = vmax.f32 %v433_v27, 0.0  ;;  %v555_v27 = vmax.f32 %v453_v35, 0.0 }
  0xf2   :  { %v1291_v25 = vpack.c.bf16 %v572_v24, %v571_v19  ;;  %v558_v19 = vmax.f32 %v460_v5, 0.0  ;;  %v603_v22 = vpack.c.bf16 %v560_v7, %v559_v6  ;;  %v525_v6 = vmax.f32 %v378_v63, 0.0 }
  0xf4   :  { %v602_v24 = vpack.c.bf16 %v558_v19, %v557_v17 }
  0xf5   :  { %v467_v30 = vpop.f32.mrf.mxu2  ;;  %v1296_v31 = vpop.f32.mrf.mxu3 }
  0xf6   :  { %v1298_v33 = vpop.f32.mrf.mxu0  ;;  %v434_v34 = vpop.f32.mrf.mxu1  ;;  %v468_v48 = vadd.f32 %v1224_v41, %v467_v30 }
  0xf7   :  { %v435_v38 = vadd.f32 %v1224_v41, %v434_v34  ;;  %v601_v34 = vpack.c.bf16 %v556_v28, %v555_v27 }
  0xf8   :  { %v561_v50 = vmax.f32 %v468_v48, 0.0 }
  0xf9   :  { %v548_v46 = vmax.f32 %v435_v38, 0.0 }
  0xfb   :  { %v597_v49 = vpack.c.bf16 %v548_v46, %v547_v36 }
  0xfd   :  { %v469_v58 = vpop.f32.mrf.mxu2  ;;  %637 = vmatpush.bf16.msrb.mxu2 %v597_v49  ;;  %v1306_v61 = vpop.f32.mrf.mxu3  ;;  %v383_v49 = vadd.f32 %v1224_v41, %v1288_v20 }
  0xfe   :  { %v470_v59 = vadd.f32 %v1224_v41, %v469_v58  ;;  %v387_v62 = vpop.f32.mrf.mxu0  ;;  %v437_v36 = vpop.f32.mrf.mxu1 }
  0xff   :  { %v438_v57 = vadd.f32 %v1224_v41, %v437_v36  ;;  %v527_v20 = vmax.f32 %v383_v49, 0.0 }
 0x100   :  { %v562_v10 = vmax.f32 %v470_v59, 0.0 }
 0x101   :  { %638 = vmatpush.bf16.msrb.mxu2 %v596_v60  ;;  %v380_v60 = vadd.f32 %v1224_v41, %v1285_v12 }
 0x102   :  { %v604_v13 = vpack.c.bf16 %v562_v10, %v561_v50 }
 0x103   :  { %v526_v3 = vmax.f32 %v380_v60, 0.0 }
 0x104   :  { %651 = vmatpush.bf16.msrb.mxu3 %v604_v13 }
 0x105   :  { %639 = vmatpush.bf16.msrb.mxu2 %v595_v11  ;;  %v1315_v21 = vpop.f32.mrf.mxu3  ;;  %v586_v13 = vpack.c.bf16 %v526_v3, %v525_v6 }
 0x106   :  { %v389_v1 = vpop.f32.mrf.mxu0  ;;  %v439_v53 = vpop.f32.mrf.mxu1 }
 0x107   :  { %v390_v39 = vadd.f32 %v1224_v41, %v389_v1  ;;  %v440_v58 = vadd.f32 %v1224_v41, %v439_v53  ;;  %v1007_v53 = vld [vmem:[%s1402_s4] sm:$0xff] }
 0x108   :  { %652 = vmatpush.bf16.msrb.mxu3 %v603_v22 }
 0x109   :  { %640 = vmatpush.bf16.msrb.mxu2 %v594_v23  ;;  %v530_v46 = vmax.f32 %v390_v39, 0.0 }
 0x10c   :  { %653 = vmatpush.bf16.msrb.mxu3 %v602_v24 }
 0x10d   :  { %641 = vmatpush.bf16.msrb.mxu2 %v1263_v37  ;;  %v1322_v29 = vpop.f32.mrf.mxu3  ;;  %v388_v37 = vadd.f32 %v1224_v41, %v387_v62  ;;  %v550_v62 = vmax.f32 %v440_v58, 0.0 }
 0x10e   :  { %v392_v30 = vpop.f32.mrf.mxu0  ;;  %v505_v28 = vadd.f32 %v1224_v41, %v1322_v29 }
 0x10f   :  { %v393_v32 = vadd.f32 %v1224_v41, %v392_v30  ;;  %v529_v52 = vmax.f32 %v388_v37, 0.0 }
 0x110   :  { %654 = vmatpush.bf16.msrb.mxu3 %v601_v34 }
 0x111   :  { %642 = vmatpush.bf16.msrb.mxu2 %v1241_v9  ;;  %v531_v42 = vmax.f32 %v393_v32, 0.0  ;;  %v581_v9 = vld [vmem:[%s1401_s3] sm:$0xf]  ;;  %v588_v59 = vpack.c.bf16 %v530_v46, %v529_v52 }
 0x112   :  { %615 = vst [vmem:[#allocation1] ss:$9 sm:$0xff] %v581_v9  ;;  %v1011_v52 = vld [vmem:[%s1402_s4 + $0x20] sm:$0xff] }
 0x114   :  { %655 = vmatpush.bf16.msrb.mxu3 %v1270_v47  ;;  %v385_v47 = vadd.f32 %v1224_v41, %v1298_v33  ;;  %v549_v33 = vmax.f32 %v438_v57, 0.0 }
 0x115   :  { %v507_v45 = vpop.f32.mrf.mxu3 }
 0x116   :  { %v394_v38 = vpop.f32.mrf.mxu0  ;;  %v528_v50 = vmax.f32 %v385_v47, 0.0  ;;  %v598_v2 = vpack.c.bf16 %v550_v62, %v549_v33  ;;  %v508_v19 = vadd.f32 %v1224_v41, %v507_v45 }
 0x117   :  { %v395_v40 = vadd.f32 %v1224_v41, %v394_v38 }
 0x118   :  { %656 = vmatpush.bf16.msrb.mxu3 %v1246_v18  ;;  %v587_v5 = vpack.c.bf16 %v528_v50, %v527_v20  ;;  %v577_v30 = vmax.f32 %v508_v19, 0.0 }
 0x119   :  { %v532_v43 = vmax.f32 %v395_v40, 0.0  ;;  %v618_v11 = vld [vmem:[#allocation1 + $0x12] sm:$0xff]  ;;  %v616_v45 = vld [vmem:[#allocation1] sm:$0xff]  ;;  %v500_v40 = vadd.f32 %v1224_v41, %v1306_v61  ;;  %v617_v46 = vld [vmem:[#allocation1 + $0x9] sm:$0xff] }
 0x11a   :  { %v619_v49 = vld [vmem:[#allocation1 + $0x1b] sm:$0xff] }
 0x11b   :  { %v589_v48 = vpack.c.bf16 %v532_v43, %v531_v42  ;;  %v576_v42 = vmax.f32 %v505_v28, 0.0  ;;  %v574_v47 = vmax.f32 %v500_v40, 0.0 }
 0x11c   :  { %657 = vmatpush.bf16.msrb.mxu3 %v598_v2  ;;  %v1041_v2 = vld [vmem:[%s1403_s5] ss:$0 sm:$0xff] }
 0x11d   :  { %624 = vmatpush.bf16.msrb.mxu1 %v589_v48  ;;  %v509_v18 = vpop.f32.mrf.mxu3  ;;  %v1012_v48 = vld [vmem:[%s1402_s4 + $0x28] sm:$0xff] }
 0x11e   :  { %v397_v55 = vpop.f32.mrf.mxu0  ;;  %v510_v22 = vadd.f32 %v1224_v41, %v509_v18  ;;  %v1010_v18 = vld [vmem:[%s1402_s4 + $0x18] sm:$0xff] }
 0x11f   :  { %658 = vmatmul.bf16.vlgmr.msrb.gmra.mxu3 %v618_v11  ;;  %v398_v23 = vadd.f32 %v1224_v41, %v397_v55 }
 0x120   :  { %v578_v34 = vmax.f32 %v510_v22, 0.0 }
 0x121   :  { %625 = vmatpush.bf16.msrb.mxu1 %v588_v59  ;;  %v533_v36 = vmax.f32 %v398_v23, 0.0 }
 0x122   :  { %v612_v29 = vpack.c.bf16 %v578_v34, %v577_v30 }
 0x125   :  { %626 = vmatpush.bf16.msrb.mxu1 %v587_v5  ;;  %v512_v7 = vpop.f32.mrf.mxu3 }
 0x126   :  { %v399_v10 = vpop.f32.mrf.mxu0  ;;  %v513_v4 = vadd.f32 %v1224_v41, %v512_v7 }
 0x127   :  { %v400_v24 = vadd.f32 %v1224_v41, %v399_v10 }
 0x128   :  { %v579_v35 = vmax.f32 %v513_v4, 0.0 }
 0x129   :  { %627 = vmatpush.bf16.msrb.mxu1 %v586_v13  ;;  %v534_v38 = vmax.f32 %v400_v24, 0.0 }
 0x12b   :  { %v590_v43 = vpack.c.bf16 %v534_v38, %v533_v36 }
 0x12d   :  { %628 = vmatpush.bf16.msrb.mxu1 %v1278_v0  ;;  %v514_v12 = vpop.f32.mrf.mxu3  ;;  %v503_v0 = vadd.f32 %v1224_v41, %v1315_v21  ;;  %v498_v21 = vadd.f32 %v1224_v41, %v1296_v31 }
 0x12e   :  { %v402_v14 = vpop.f32.mrf.mxu0  ;;  %v515_v16 = vadd.f32 %v1224_v41, %v514_v12 }
 0x12f   :  { %v403_v17 = vadd.f32 %v1224_v41, %v402_v14  ;;  %v575_v37 = vmax.f32 %v503_v0, 0.0  ;;  %v573_v9 = vmax.f32 %v498_v21, 0.0 }
 0x130   :  { %v580_v56 = vmax.f32 %v515_v16, 0.0 }
 0x131   :  { %629 = vmatpush.bf16.msrb.mxu1 %v1266_v44  ;;  %v535_v27 = vmax.f32 %v403_v17, 0.0  ;;  %v611_v31 = vpack.c.bf16 %v576_v42, %v575_v37  ;;  %v610_v61 = vpack.c.bf16 %v574_v47, %v573_v9 }
 0x132   :  { %v613_v32 = vpack.c.bf16 %v580_v56, %v579_v35 }
 0x135   :  { %630 = vmatpush.bf16.msrb.mxu1 %v1244_v15 }
 0x136   :  { %v404_v1 = vpop.f32.mrf.mxu0 }
 0x137   :  { %v405_v44 = vadd.f32 %v1224_v41, %v404_v1  ;;  %v1013_v41 = vld [vmem:[%s1402_s4 + $0x30] sm:$0xff] }
 0x139   :  { %631 = vmatpush.bf16.msrb.mxu1 %v1229_v51  ;;  %v536_v15 = vmax.f32 %v405_v44, 0.0  ;;  %v1014_v51 = vld [vmem:[%s1402_s4 + $0x38] sm:$0xff] }
 0x13b   :  { %v591_v39 = vpack.c.bf16 %v536_v15, %v535_v27 }
 0x13c   :  { %632 = vmatmul.bf16.vlgmr.msrb.gmra.mxu1 %v616_v45 }
 0x13d   :  { %663 = vmatpush.bf16.msra.mxu1 %v613_v32  ;;  %643 = vmatpush.bf16.msrb.mxu2 %v591_v39 }
 0x141   :  { %664 = vmatpush.bf16.msra.mxu1 %v612_v29  ;;  %644 = vmatpush.bf16.msrb.mxu2 %v590_v43 }
 0x144   :  { %645 = vmatmul.bf16.vlgmr.msrb.gmra.mxu2 %v617_v46 }
 0x145   :  { %665 = vmatpush.bf16.msra.mxu1 %v611_v31  ;;  %745 = vmatpush.bf16.msra.mxu2 %v1014_v51 }
 0x149   :  { %666 = vmatpush.bf16.msra.mxu1 %v610_v61  ;;  %746 = vmatpush.bf16.msra.mxu2 %v1013_v41 }
 0x14d   :  { %667 = vmatpush.bf16.msra.mxu1 %v1291_v25  ;;  %747 = vmatpush.bf16.msra.mxu2 %v1012_v48 }
 0x151   :  { %668 = vmatpush.bf16.msra.mxu1 %v1283_v8  ;;  %748 = vmatpush.bf16.msra.mxu2 %v1011_v52  ;;  %v1009_v8 = vld [vmem:[%s1402_s4 + $0x10] sm:$0xff] }
 0x155   :  { %669 = vmatpush.bf16.msra.mxu1 %v1273_v54  ;;  %749 = vmatpush.bf16.msra.mxu2 %v1010_v18 }
 0x159   :  { %670 = vmatpush.bf16.msra.mxu1 %v1253_v26  ;;  %750 = vmatpush.bf16.msra.mxu2 %v1009_v8  ;;  %v1008_v26 = vld [vmem:[%s1402_s4 + $0x8] sm:$0xff] }
 0x15c   :  { %671 = vmatmul.bf16.vlgmr.msra.gmra.mxu1 %v619_v49 }
 0x15d   :  { %751 = vmatpush.bf16.msra.mxu2 %v1008_v26 }
 0x161   :  { %752 = vmatpush.bf16.msra.mxu2 %v1007_v53 }
 0x1a2   :  { %v659_v54 = vpop.f32.mrf.mxu3 }
 0x1aa   :  { %v661_v25 = vpop.f32.mrf.mxu3 }
 0x1b9   :  { %v633_v55 = vpop.f32.mrf.mxu1 }
 0x1c1   :  { %v635_v57 = vpop.f32.mrf.mxu1 }
 0x1c7   :  { %v646_v58 = vpop.f32.mrf.mxu2 }
 0x1c8   :  { %v647_v50 = vadd.f32 %v646_v58, %v633_v55 }
 0x1ca   :  { %v660_v59 = vadd.f32 %v659_v54, %v647_v50 }
 0x1cf   :  { %v648_v60 = vpop.f32.mrf.mxu2 }
 0x1d9   :  { %v672_v33 = vpop.f32.mrf.mxu1 }
 0x1da   :  { %v673_v62 = vadd.f32 %v672_v33, %v660_v59 }
 0x1dc   :  { %v676_v63 = vpack.c.bf16 %v673_v62, %v673_v62 }
 0x1de   :  { %753 = vmatmul.bf16.vlgmr.msra.gmra.mxu2 %v676_v63 }
 0x1e1   :  { %v674_v20 = vpop.f32.mrf.mxu1 }
 0x261   :  { %v754_v3 = vpop.f32.mrf.mxu2 }
 0x262   :  { %v755_v5 = vadd.f32 %v1041_v2, %v754_v3 }
 0x264   :  { %758 = vst [vmem:[#allocation2] sm:$0x3] %v755_v5 }
 0x265   :  { %769 = dma.vmem_to_hbm [thread:$0]  %s765_s21, 32, %s767_s23, [#allocation3]  }
 0x269   :  { %v756_v6 = vpop.f32.mrf.mxu2 }
 0x26a   :  { %1066 = dma.done.wait [#allocation3], 32  }
 0x26b   :  { %1067 = vsyncadd [#allocation3], 4294967264 }
 0x26c   :  { %774 = vsyncpa [#allocation3], 1 }

</bundles_post_ra>
